<compile_context>
chip_gen: v7x
topology: tpu7x:2x2x1
jax: 0.10.0
libtpu: 0.0.40
codegen_flags: <defaults>
</compile_context>

<pallas_src>
import functools
import math

import numpy as np
import jax
import jax.numpy as jnp
from jax.experimental import pallas as pl
from jax.experimental.pallas import tpu as pltpu


# ----------------------------- kernels ---------------------------------------

def _mlp_kernel(x_ref, w1_ref, b1_ref, w2_ref, b2_ref, o_ref, *, vpu_first_layer):
    # x: (TM, n_input), w1: (n_input, Hpad), b1: (1, Hpad),
    # w2: (Hpad, emb_pad), b2: (1, emb_pad), o: (TM, emb_pad)
    x = x_ref[...]
    w1 = w1_ref[...]
    if vpu_first_layer:
        # K (= n_input) is tiny: a K<8 matmul leaves the systolic array nearly
        # empty, so do layer 1 as broadcast multiply-adds on the VPU (f32).
        k_dim = w1.shape[0]
        h = (x[:, 0:1].astype(jnp.float32) * w1[0:1, :].astype(jnp.float32)
             + b1_ref[...].astype(jnp.float32))
        for k in range(1, k_dim):
            h = h + x[:, k:k + 1].astype(jnp.float32) * w1[k:k + 1, :].astype(jnp.float32)
    else:
        h = jnp.dot(x, w1, preferred_element_type=jnp.float32) + b1_ref[...]
    h = jnp.where(h >= 0.0, h, 0.1 * h)          # LeakyReLU(negative_slope=0.1)
    o_ref[...] = (jnp.dot(h, w2_ref[...], preferred_element_type=jnp.float32)
                  + b2_ref[...]).astype(o_ref.dtype)


def _linear_kernel(x_ref, w_ref, b_ref, o_ref, *, vpu_matmul):
    x = x_ref[...]
    w = w_ref[...]
    if vpu_matmul:
        k_dim = w.shape[0]
        acc = (x[:, 0:1].astype(jnp.float32) * w[0:1, :].astype(jnp.float32)
               + b_ref[...].astype(jnp.float32))
        for k in range(1, k_dim):
            acc = acc + x[:, k:k + 1].astype(jnp.float32) * w[k:k + 1, :].astype(jnp.float32)
    else:
        acc = jnp.dot(x, w, preferred_element_type=jnp.float32) + b_ref[...]
    o_ref[...] = acc.astype(o_ref.dtype)


# ----------------------------- wrapper ----------------------------------------

def _round_up(x, m):
    return ((x + m - 1) // m) * m


def mlp_embedding_forward(x, params, *, linear=False, block_rows=512):
    """x: (..., n_input) -> (..., embedding_dim). params:
       linear=False: (w1 (n_in, n_hidden), b1 (1, n_hidden),
                      w2 (n_hidden, emb),  b2 (1, emb))
       linear=True:  (w (n_in, emb), b (1, emb))
    """
    *lead, n_input = x.shape
    rows = int(np.prod(lead)) if lead else 1
    x2 = x.reshape(rows, n_input)                 # keep native dtype (no f32 upcast pass)

    # Sublane-pad rows to a multiple of 8 (at most +7 rows).
    rows8 = _round_up(rows, 8)
    if rows8 != rows:
        x2 = jnp.pad(x2, ((0, rows8 - rows), (0, 0)))

    # Balanced row tiles; split into >=2 grid steps (when enough work) so
    # v7x's two TensorCores both run via the "parallel" grid axis.
    num_tiles = pl.cdiv(rows8, block_rows)
    if rows8 >= 16:
        num_tiles = max(num_tiles, 2)
    tm = _round_up(pl.cdiv(rows8, num_tiles), 8)
    grid = (pl.cdiv(rows8, tm),)

    if linear:
        w, b = params
        emb = w.shape[1]
        w_dtype = w.dtype
    else:
        w1, b1, w2, b2 = params
        emb = w2.shape[1]
        w_dtype = w2.dtype

    # Lane-pad the output dim to a multiple of 128 so output stores are dense.
    emb_pad = _round_up(max(emb, 128), 128)
    out_dtype = jnp.result_type(x.dtype, w_dtype)

    if linear:
        if emb_pad != emb:
            w = jnp.pad(w, ((0, 0), (0, emb_pad - emb)))
            b = jnp.pad(b, ((0, 0), (0, emb_pad - emb)))
        weight_bytes = (w.size + b.size) * jnp.dtype(w.dtype).itemsize
    else:
        n_hidden = w1.shape[1]
        # Lane-pad hidden dim too (zero columns are exact no-ops through
        # LeakyReLU and contribute nothing to the second matmul).
        h_pad = _round_up(max(n_hidden, 128), 128)
        if h_pad != n_hidden:
            w1 = jnp.pad(w1, ((0, 0), (0, h_pad - n_hidden)))
            b1 = jnp.pad(b1, ((0, 0), (0, h_pad - n_hidden)))
            w2 = jnp.pad(w2, ((0, h_pad - n_hidden), (0, 0)))
        if emb_pad != emb:
            w2 = jnp.pad(w2, ((0, 0), (0, emb_pad - emb)))
            b2 = jnp.pad(b2, ((0, 0), (0, emb_pad - emb)))
        weight_bytes = sum(p.size * jnp.dtype(p.dtype).itemsize
                           for p in (w1, b1, w2, b2))

    # VMEM budget: double-buffered x tile + out tile + (double-buffered) weights.
    vmem_est = (2 * tm * n_input * jnp.dtype(x2.dtype).itemsize
                + 2 * tm * emb_pad * jnp.dtype(out_dtype).itemsize
                + 2 * weight_bytes)
    vmem_lim = int(vmem_est * 1.25) if vmem_est > (30 << 20) else None
    cparams = pltpu.CompilerParams(dimension_semantics=("parallel",),
                                   vmem_limit_bytes=vmem_lim)

    if linear:
        out = pl.pallas_call(
            functools.partial(_linear_kernel, vpu_matmul=(n_input < 8)),
            out_shape=jax.ShapeDtypeStruct((rows8, emb_pad), out_dtype),
            grid=grid,
            in_specs=[
                pl.BlockSpec((tm, n_input), lambda i: (i, 0)),
                pl.BlockSpec(w.shape, lambda i: (0, 0)),
                pl.BlockSpec(b.shape, lambda i: (0, 0)),
            ],
            out_specs=pl.BlockSpec((tm, emb_pad), lambda i: (i, 0)),
            compiler_params=cparams,
        )(x2, w, b)
    else:
        out = pl.pallas_call(
            functools.partial(_mlp_kernel, vpu_first_layer=(n_input < 8)),
            out_shape=jax.ShapeDtypeStruct((rows8, emb_pad), out_dtype),
            grid=grid,
            in_specs=[
                pl.BlockSpec((tm, n_input), lambda i: (i, 0)),
                pl.BlockSpec((n_input, h_pad), lambda i: (0, 0)),
                pl.BlockSpec((1, h_pad), lambda i: (0, 0)),
                pl.BlockSpec((h_pad, emb_pad), lambda i: (0, 0)),
                pl.BlockSpec((1, emb_pad), lambda i: (0, 0)),
            ],
            out_specs=pl.BlockSpec((tm, emb_pad), lambda i: (i, 0)),
            compiler_params=cparams,
        )(x2, w1, b1, w2, b2)

    out = out[:rows, :emb]
    return out.reshape(*lead, emb)


# ----------------------------- parameter init (PyTorch nn.Linear style) -------

def init_params(key, n_input, n_hidden, embedding_dim, linear=False):
    keys = iter(jax.random.split(key, 8))

    def lin(din, dout):
        bound = 1.0 / math.sqrt(din)
        w = jax.random.uniform(next(keys), (dout, din), jnp.float32, -bound, bound)
        b = jax.random.uniform(next(keys), (dout,), jnp.float32, -bound, bound)
        return w.T, b.reshape(1, dout)  # pre-transposed weight, 2-D bias

    if linear:
        w, b = lin(n_input, embedding_dim)
        return (w, b)
    w1, b1 = lin(n_input, n_hidden)
    w2, b2 = lin(n_hidden, embedding_dim)
    return (w1, b1, w2, b2)


# ----------------------------- reference (numpy, f32) --------------------------

def ref_forward(x, params, linear=False):
    x = np.asarray(x, np.float32)
    if linear:
        w, b = (np.asarray(p, np.float32) for p in params)
        return x @ w + b
    w1, b1, w2, b2 = (np.asarray(p, np.float32) for p in params)
    h = x @ w1 + b1
    h = np.where(h >= 0.0, h, 0.1 * h)
    return h @ w2 + b2


# ----------------------------- main --------------------------------------------

if __name__ == "__main__":
    B, L, n_input, n_hidden, embedding_dim = 2, 16, 1, 32, 32
    key = jax.random.PRNGKey(0)
    kx, kp, kpl = jax.random.split(key, 3)

    x = jax.random.normal(kx, (B, L, n_input), jnp.float32)

    # default (MLP) path
    params = init_params(kp, n_input, n_hidden, embedding_dim, linear=False)
    out = mlp_embedding_forward(x, params, linear=False)
    jax.block_until_ready(out)
    ref = ref_forward(np.asarray(x).reshape(-1, n_input), params).reshape(
        B, L, embedding_dim)
    assert out.shape == (B, L, embedding_dim)
    assert np.allclose(np.asarray(out), ref, rtol=1e-2, atol=1e-2)

    # linear=True path
    lparams = init_params(kpl, n_input, n_hidden, embedding_dim, linear=True)
    lout = mlp_embedding_forward(x, lparams, linear=True)
    jax.block_until_ready(lout)
    lref = ref_forward(np.asarray(x).reshape(-1, n_input), lparams,
                       linear=True).reshape(B, L, embedding_dim)
    assert lout.shape == (B, L, embedding_dim)
    assert np.allclose(np.asarray(lout), lref, rtol=1e-2, atol=1e-2)

    print("KERNEL_OK")
</pallas_src>

<mosaic_0001>
module attributes {stable_mosaic.version = 11 : i64} {
  func.func @_mlp_kernel(%arg0: i32, %arg1: memref<16x1xf32, #tpu.memory_space<vmem>>, %arg2: memref<1x128xf32, #tpu.memory_space<vmem>>, %arg3: memref<1x128xf32, #tpu.memory_space<vmem>>, %arg4: memref<128x128xf32, #tpu.memory_space<vmem>>, %arg5: memref<1x128xf32, #tpu.memory_space<vmem>>, %arg6: memref<16x128xf32, #tpu.memory_space<vmem>>) attributes {dimension_semantics = [#tpu.dimension_semantics<parallel>], iteration_bounds = array<i64: 2>, scalar_prefetch = 0 : i64, scratch_operands = 0 : i64, tpu.core_type = #tpu.core_type<tc>, window_params = [{transform_indices = @transform_0, window_bounds = array<i64: 16, 1>}, {pipeline_mode = #tpu.pipeline_mode<synchronous>, transform_indices = @transform_1, window_bounds = array<i64: 1, 128>}, {pipeline_mode = #tpu.pipeline_mode<synchronous>, transform_indices = @transform_2, window_bounds = array<i64: 1, 128>}, {pipeline_mode = #tpu.pipeline_mode<synchronous>, transform_indices = @transform_3, window_bounds = array<i64: 128, 128>}, {pipeline_mode = #tpu.pipeline_mode<synchronous>, transform_indices = @transform_4, window_bounds = array<i64: 1, 128>}, {transform_indices = @transform_5, window_bounds = array<i64: 16, 128>}]} {
    %c0 = arith.constant 0 : index
    %c0_0 = arith.constant 0 : index
    %0 = vector.load %arg1[%c0, %c0_0] : memref<16x1xf32, #tpu.memory_space<vmem>>, vector<16x1xf32>
    %c0_1 = arith.constant 0 : index
    %c0_2 = arith.constant 0 : index
    %1 = vector.load %arg2[%c0_1, %c0_2] : memref<1x128xf32, #tpu.memory_space<vmem>>, vector<1x128xf32>
    %2 = vector.broadcast %0 : vector<16x1xf32> to vector<16x128xf32>
    %3 = vector.broadcast %1 : vector<1x128xf32> to vector<16x128xf32>
    %4 = arith.mulf %2, %3 : vector<16x128xf32>
    %c0_3 = arith.constant 0 : index
    %c0_4 = arith.constant 0 : index
    %5 = vector.load %arg3[%c0_3, %c0_4] : memref<1x128xf32, #tpu.memory_space<vmem>>, vector<1x128xf32>
    %6 = vector.broadcast %5 : vector<1x128xf32> to vector<16x128xf32>
    %7 = arith.addf %4, %6 : vector<16x128xf32>
    %cst = arith.constant 0.000000e+00 : f32
    %8 = vector.broadcast %cst : f32 to vector<16x128xf32>
    %9 = arith.cmpf oge, %7, %8 : vector<16x128xf32>
    %cst_5 = arith.constant 1.000000e-01 : f32
    %10 = vector.broadcast %cst_5 : f32 to vector<16x128xf32>
    %11 = arith.mulf %10, %7 : vector<16x128xf32>
    %12 = arith.select %9, %7, %11 : vector<16x128xi1>, vector<16x128xf32>
    %c0_6 = arith.constant 0 : index
    %c0_7 = arith.constant 0 : index
    %13 = vector.load %arg4[%c0_6, %c0_7] : memref<128x128xf32, #tpu.memory_space<vmem>>, vector<128x128xf32>
    %cst_8 = arith.constant dense<0.000000e+00> : vector<16x128xf32>
    %14 = tpu.matmul %12, %13, %cst_8 {dimension_numbers = #tpu.dot_dimension_numbers<[1], [0], [0], [1], [0, 0, 1, 1], [], []>} : vector<16x128xf32>, vector<128x128xf32>, vector<16x128xf32> -> vector<16x128xf32>
    %c0_9 = arith.constant 0 : index
    %c0_10 = arith.constant 0 : index
    %15 = vector.load %arg5[%c0_9, %c0_10] : memref<1x128xf32, #tpu.memory_space<vmem>>, vector<1x128xf32>
    %16 = vector.broadcast %15 : vector<1x128xf32> to vector<16x128xf32>
    %17 = arith.addf %14, %16 : vector<16x128xf32>
    %c0_11 = arith.constant 0 : index
    %c0_12 = arith.constant 0 : index
    %18 = vector.load %arg6[%c0_11, %c0_12] : memref<16x128xf32, #tpu.memory_space<vmem>>, vector<16x128xf32>
    tpu.vector_store %arg6[%c0_11, %c0_12], %17 {strides = array<i32>} : memref<16x128xf32, #tpu.memory_space<vmem>>, vector<16x128xf32>,
    return
  }
  func.func @transform_0(%arg0: i32) -> (i32, i32) {
    %c0_i32 = arith.constant 0 : i32
    %c0_i32_0 = arith.constant 0 : i32
    return %arg0, %c0_i32 : i32, i32
  }
  func.func @transform_1(%arg0: i32) -> (i32, i32) {
    %c0_i32 = arith.constant 0 : i32
    %c0_i32_0 = arith.constant 0 : i32
    %c0_i32_1 = arith.constant 0 : i32
    return %c0_i32, %c0_i32_0 : i32, i32
  }
  func.func @transform_2(%arg0: i32) -> (i32, i32) {
    %c0_i32 = arith.constant 0 : i32
    %c0_i32_0 = arith.constant 0 : i32
    %c0_i32_1 = arith.constant 0 : i32
    return %c0_i32, %c0_i32_0 : i32, i32
  }
  func.func @transform_3(%arg0: i32) -> (i32, i32) {
    %c0_i32 = arith.constant 0 : i32
    %c0_i32_0 = arith.constant 0 : i32
    %c0_i32_1 = arith.constant 0 : i32
    return %c0_i32, %c0_i32_0 : i32, i32
  }
  func.func @transform_4(%arg0: i32) -> (i32, i32) {
    %c0_i32 = arith.constant 0 : i32
    %c0_i32_0 = arith.constant 0 : i32
    %c0_i32_1 = arith.constant 0 : i32
    return %c0_i32, %c0_i32_0 : i32, i32
  }
  func.func @transform_5(%arg0: i32) -> (i32, i32) {
    %c0_i32 = arith.constant 0 : i32
    %c0_i32_0 = arith.constant 0 : i32
    return %arg0, %c0_i32 : i32, i32
  }
}

</mosaic_0001>

<bundles_post_ra>
// kernel: tpu_custom_call.1
= control target key start
LH: loop header
LB: loop body
LE: loop exit
PB: predicated region body
PF: predicated region fallthrough
CT: control target
= control target key end

     0   :  { %10 = vsyncpa [#allocation3], 0  ;;  %s903_s0 = inlined_call_operand.vmem [shape: f32[32,1], index: 0, kind: input, shape index: {}]   ;;  %s904_s1 = inlined_call_operand.vmem [shape: f32[1,128], index: 1, kind: input, shape index: {}]   ;;  %s905_s2 = inlined_call_operand.vmem [shape: f32[1,128], index: 2, kind: input, shape index: {}]   ;;  %s906_s3 = inlined_call_operand.hbm [shape: f32[128,128], index: 3, kind: input, shape index: {}]   ;;  %s907_s4 = inlined_call_operand.vmem [shape: f32[1,128], index: 4, kind: input, shape index: {}]   ;;  %s908_s5 = inlined_call_operand.hbm [shape: f32[32,128], index: 5, kind: output, shape index: {}]  }
   0x1   :  { %11 = vsyncpa [#allocation4], 0 }
   0x2   :  { %13 = vsyncpa [#allocation4 + $0x1], 0  ;;  %s757_s18 = smov 0   ;;  %s759_s19 = smov 0  }
   0x3   :  { %s761_s20 = smov 0   ;;  %s763_s21 = smov 0  }
   0x4 LB: > { %s778_s22 = sadd.s32 4294967295, %s718_s21   ;;  %s465_s23 = sadd.s32 4294967294, %s718_s21   ;;  %s718_s21 = sphi %s763_s21, %s924_s21   ;;  %s714_s20 = sphi %s761_s20, %s923_s20   ;;  %s710_s19 = sphi %s759_s19, %s922_s19   ;;  %s706_s18 = sphi %s757_s18, %s921_s18  }
   0x5   : > { %s782_s24 = sadd.s32 1, %s718_s21   ;;  %s136_s25 = sadd.s32 1, %s714_s20 }
   0x6   : > { %s133_s26 = ssub.s32 %s718_s21, %s782_s24  ;;  %p146_p0 = scmp.ne.s32.totalorder %s714_s20, %s710_s19 }
   0x7   : > { %p134_p1 = scmp.eq.s32.totalorder %s133_s26, 0  ;;  %p147_p2 = scmp.eq.s32.totalorder %s778_s22, 1 }
   0x8   : > { %p152_p3 = scmp.ne.s32.totalorder %s710_s19, %s706_s18  ;;  %p153_p4 = scmp.eq.s32.totalorder %s465_s23, 1 }
   0x9   : > { %s793_s27 = scalar_select %p134_p1, %s714_s20, %s136_s25  }
   0xa   : > { %p795_p5 = por %p147_p2, %p146_p0  ;;  %p799_p6 = por %p153_p4, %p152_p3 }
   0xb   : > { %p466_p7 = scmp.ge.s32.totalorder %s718_s21, 1  ;;  %p160_p8 = scmp.lt.s32.totalorder %s718_s21, 3 }
   0xc   : > { %s912_s28 = scalar_select %p795_p5, 1, 0 }
   0xd   : > { %s913_s29 = scalar_select %p799_p6, 1, 0 }
   0xe   : > { %p909_p9 = scmp.eq.s32.totalorder %s778_s22, 0  ;;  %p806_p10 = pnand %p466_p7, %p160_p8 }
   0xf   : > { %s720_s6 = smov [#allocation2]   ;;  %s624_s11 = scalar_lea.hbm %s906_s3, 2048 }
  0x10   : > { %s914_s30 = scalar_select %p806_p10, 1, 0 }
  0x11   : > { %s178_s7 = sshll.u32 %s720_s6, 4  ;;  %p574_p11 = pneg %p806_p10  ;;  %s179_s7 = int_to_ptr.vmem [resolvable:$true] %s178_s7 }
  0x12   : > { %p625_p13 = scmp.ne.s32.totalorder %s906_s3, %s624_s11  ;;  %p631_p3 = scmp.lt.u32.totalorder %s624_s11, %s906_s3 }
  0x13   : > { %p814_p12 = pnand %p909_p9, %p574_p11 }
  0x15   : > { %p626_p0 = pneg %p814_p12 }
  0x17   : > { %p627_p1 = pnand %p626_p0, %p625_p13 }
  0x19   : > { %p628_p2 = pneg %p627_p1 }
  0x1b   : > { %p633_p4 = pnand %p631_p3, %p628_p2 }
  0x1d   : > { %636 = shalt.err (!%p633_p4)
}
  0x1e   : > { %s637_s16 = scalar_lea.vmem %s179_s7, 2048  ;;  %p645_p9 = scmp.lt.s32.totalorder %s179_s7, %s179_s7 }
  0x1f   : > { %p638_p7 = scmp.ne.s32.totalorder %s179_s7, %s637_s16  ;;  %p646_p6 = scmp.lt.s32.totalorder %s637_s16, %s637_s16 }
  0x21   : > { %p640_p8 = pnand %p638_p7, %p626_p0  ;;  %p647_p5 = por %p646_p6, %p645_p9 }
  0x23   : > { %p641_p11 = pneg %p640_p8 }
  0x25   : > { %p648_p10 = pnand %p647_p5, %p641_p11 }
  0x27   : > { %651 = shalt.err (!%p648_p10)
}
  0x28   : > { %s721_s17 = smov 128   ;;  %s722_s23 = smov 8  }
  0x29   : > { %577 = dma.hbm_to_vmem [thread:$0]  (!%p814_p12), %s906_s3, 2048, %s179_s7, [#allocation3], %s721_s17, %s721_s17, %s722_s23  }
  0x2a   : > { %p916_p13 = scmp.ne.s32.totalorder %s914_s30, 0 }
  0x2b   : > { %p917_p1 = scmp.eq.s32.totalorder (!%p916_p13), %s778_s22, 0 }
  0x2c   : > { %206 = sbr.rel (%p916_p13) target bundleno = 428 (0x1ac), region = 40 }
  0x33   : > { %697 = dma.done.wait (%p917_p1), [#allocation3], 2048   ;;  %p918_p0 = pmov %p917_p1 }
  0x34   : > { %s472_s6 = sshll.u32 %s778_s22, 1  ;;  %v723_v0 = vmov 0   ;;  %v277_v2 = vld [vmem:[#allocation2] sm:$0xff]  ;;  %v278_v3 = vld [vmem:[#allocation2 + $0x8] sm:$0xff]  ;;  %v279_v4 = vld [vmem:[#allocation2 + $0x10] sm:$0xff]  ;;  %s231_s14 = sand.u32 1, %s710_s19  }
  0x35   : > { %699 = vsyncadd (%p918_p0), [#allocation3], 4294965248  ;;  %623 = vset.pattern.permute.xlu0 %v723_v0  ;;  %p235_p5 = scmp.lt.s32.totalorder %s472_s6, 3  ;;  %v280_v5 = vld [vmem:[#allocation2 + $0x18] sm:$0xff]  ;;  %v536_v7 = vpack.c.bf16 %v278_v3, %v277_v2  ;;  %v281_v9 = vld [vmem:[#allocation2 + $0x20] sm:$0xff]  ;;  %s471_s15 = sshll.u32 %s231_s14, 4 }
  0x36   : > { %v540_v8 = vpack.c.bf16 %v280_v5, %v279_v4  ;;  %v282_v10 = vld [vmem:[#allocation2 + $0x28] sm:$0xff]  ;;  %v283_v12 = vld [vmem:[#allocation2 + $0x30] sm:$0xff]  ;;  %v284_v13 = vld [vmem:[#allocation2 + $0x38] sm:$0xff]  ;;  %s233_s23 = scalar_lea.vmem [#allocation5], %s471_s15  ;;  %s482_s26 = sshll.u32 %s778_s22, 8 }
  0x37   : > { %s926_s6 = smov (!%p235_p5, %s472_s6), 3  ;;  %537 = vmatprep.subr.bf16.mxu0 %v536_v7  ;;  %v544_v11 = vpack.c.bf16 %v282_v10, %v281_v9  ;;  %v548_v14 = vpack.c.bf16 %v284_v13, %v283_v12  ;;  %v285_v15 = vld [vmem:[#allocation2 + $0x40] sm:$0xff]  ;;  %v286_v16 = vld [vmem:[#allocation2 + $0x48] sm:$0xff]  ;;  %v287_v18 = vld [vmem:[#allocation2 + $0x50] sm:$0xff]  ;;  %s391_s25 = sshll.u32 %s233_s23, 4  ;;  %s855_s25 = int_to_ptr.vmem [resolvable:$true] %s391_s25 }
  0x38   : > { %s473_s8 = sshll.u32 %s926_s6, 3  ;;  %539 = vmatpush3.bf16.msra.mxu0 %v536_v7  ;;  %v552_v17 = vpack.c.bf16 %v286_v16, %v285_v15  ;;  %v288_v19 = vld [vmem:[#allocation2 + $0x58] sm:$0xff]  ;;  %v289_v21 = vld [vmem:[#allocation2 + $0x60] sm:$0xff]  ;;  %v290_v22 = vld [vmem:[#allocation2 + $0x68] sm:$0xff]  ;;  %s860_s9 = scalar_lea.hbm %s908_s5, %s482_s26 }
  0x39   : > { %s238_s7 = scalar_lea.vmem %s903_s0, %s473_s8  ;;  %541 = vmatprep.subr.bf16.mxu0 %v540_v8  ;;  %v556_v20 = vpack.c.bf16 %v288_v19, %v287_v18  ;;  %v560_v23 = vpack.c.bf16 %v290_v22, %v289_v21  ;;  %v291_v24 = vld [vmem:[#allocation2 + $0x70] sm:$0xff]  ;;  %v292_v25 = vld [vmem:[#allocation2 + $0x78] sm:$0xff]  ;;  %v474_v27 = vld [vmem:[%s904_s1] ss:$0 sm:$0xff]  ;;  %s862_s10 = scalar_lea.sflag [#allocation4], %s231_s14 }
  0x3a   : > { %v241_v1 = vld [vmem:[%s238_s7] sm:$0xff]  ;;  %v242_v6 = vld [vmem:[%s238_s7 + $0x8] sm:$0xff]  ;;  %v564_v26 = vpack.c.bf16 %v292_v25, %v291_v24  ;;  %s652_s7 = scalar_lea.vmem %s855_s25, 256  ;;  %p919_p9 = scmp.ne.s32.totalorder %s912_s28, 0 }
  0x3b   : > { %246 = vperm.xlu0 %623, %v241_v1   ;;  %v475_v28 = vld [vmem:[%s905_s2] ss:$0 sm:$0xff]  ;;  %p653_p6 = scmp.ne.s32.totalorder %s855_s25, %s652_s7  ;;  %s724_s22 = smov [#allocation5]  }
  0x3c   : > { %543 = vmatpush3.bf16.msra.mxu0 %v540_v8  ;;  %v476_v39 = vld [vmem:[%s907_s4] ss:$0 sm:$0xff]  ;;  %s656_s30 = sshll.u32 %s724_s22, 4  ;;  %s657_s30 = int_to_ptr.vmem [resolvable:$false] %s656_s30 }
  0x3d   : > { %545 = vmatprep.subr.bf16.mxu0 %v544_v11  ;;  %p654_p10 = pnand %p653_p6, %p919_p9  ;;  %s658_s11 = scalar_lea.vmem %s657_s30, 512 }
  0x3e   : > { %p659_p2 = scmp.lt.s32.totalorder %s855_s25, %s657_s30  ;;  %p660_p3 = scmp.lt.s32.totalorder %s658_s11, %s652_s7 }
  0x3f   : > { %251 = vperm.xlu0 %623, %v242_v6   ;;  %p655_p12 = pneg %p654_p10 }
  0x40   : > { %547 = vmatpush3.bf16.msra.mxu0 %v544_v11  ;;  %p661_p4 = por %p660_p3, %p659_p2 }
  0x41   : > { %549 = vmatprep.subr.bf16.mxu0 %v548_v14 }
  0x42   : > { %p662_p7 = pnand %p661_p4, %p655_p12 }
  0x44   : > { %551 = vmatpush3.bf16.msra.mxu0 %v548_v14 }
  0x45   : > { %553 = vmatprep.subr.bf16.mxu0 %v552_v17 }
  0x48   : > { %555 = vmatpush3.bf16.msra.mxu0 %v552_v17 }
  0x49   : > { %557 = vmatprep.subr.bf16.mxu0 %v556_v20 }
  0x4c   : > { %559 = vmatpush3.bf16.msra.mxu0 %v556_v20 }
  0x4d   : > { %561 = vmatprep.subr.bf16.mxu0 %v560_v23 }
  0x50   : > { %563 = vmatpush3.bf16.msra.mxu0 %v560_v23 }
  0x51   : > { %565 = vmatprep.subr.bf16.mxu0 %v564_v26 }
  0x54   : > { %567 = vmatpush3.bf16.msra.mxu0 %v564_v26 }
  0xba   : > { %v247_v29 = vpop.permute.xlu0 %246 }
  0xbb   : > { %v260_v30 = vmul.f32 %v474_v27, %v247_v29 }
  0xbd   : > { %v269_v31 = vadd.f32 %v475_v28, %v260_v30 }
  0xbe   : > { %v252_v32 = vpop.permute.xlu0 %251 }
  0xbf   : > { %v261_v33 = vmul.f32 %v474_v27, %v252_v32  ;;  %vm271_vm0 = vcmp.ge.f32.partialorder %v269_v31, 0.0  ;;  %v273_v34 = vmul.f32 0.1, %v269_v31 }
  0xc1   : > { %v270_v35 = vadd.f32 %v475_v28, %v261_v33  ;;  %v275_v36 = vsel %vm271_vm0, %v269_v31, %v273_v34 }
  0xc2   : > { %533 = vmatprep.mubr.f32.mxu0 %v275_v36 }
  0xc3   : > { %vm272_vm1 = vcmp.ge.f32.partialorder %v270_v35, 0.0  ;;  %v274_v37 = vmul.f32 0.1, %v270_v35 }
  0xc5   : > { %v276_v38 = vsel %vm272_vm1, %v270_v35, %v274_v37 }
  0xc6   : > { %534 = vmatmul.mubr.f32.vlgmr.msra.gmra.mrb[0].mxu0 %v276_v38 }
 0x199   : > { %v535_v40 = vpop.f32.mrb[0].mxu0 }
 0x19a   : > { %v372_v41 = vadd.f32 %v535_v40, %v476_v39  ;;  %v366_v42 = vpop.f32.mrb[1].mxu0 }
 0x19b   : > { %v367_v43 = vadd.f32 %v476_v39, %v366_v42 }
 0x19c   : > { %376 = vst [vmem:[%s233_s23 + $0x8] sm:$0xff] %v372_v41 }
 0x19d   : > { %375 = vst [vmem:[%s233_s23] sm:$0xff] %v367_v43 }
 0x19e   : > { %665 = shalt.err (!%p662_p7)
}
 0x19f   : > { %s666_s12 = scalar_lea.hbm %s860_s9, 256  ;;  %s670_s15 = scalar_lea.hbm %s908_s5, 512 }
 0x1a0   : > { %p667_p8 = scmp.ne.s32.totalorder %s860_s9, %s666_s12  ;;  %p671_p1 = scmp.lt.u32.totalorder %s860_s9, %s908_s5 }
 0x1a1   : > { %p672_p0 = scmp.lt.u32.totalorder %s670_s15, %s666_s12  ;;  %p674_p6 = scmp.lt.u32.totalorder %s666_s12, %s860_s9 }
 0x1a2   : > { %p668_p11 = pnand %p667_p8, %p919_p9 }
 0x1a3   : > { %p673_p5 = por %p672_p0, %p671_p1 }
 0x1a4   : > { %p669_p13 = pneg %p668_p11 }
 0x1a5   : > { %p675_p10 = por %p674_p6, %p673_p5 }
 0x1a7   : > { %p676_p12 = pnand %p675_p10, %p669_p13 }
 0x1a9   : > { %679 = shalt.err (!%p676_p12)
}
 0x1aa   : > { %s725_s23 = smov 128   ;;  %s726_s26 = smov 8  }
 0x1ab   : > { %572 = dma.vmem_to_hbm [thread:$0]  (%p919_p9), %s855_s25, 256, %s860_s9, %s862_s10, %s725_s23, %s725_s23, %s726_s26  }
 0x1ac PF: > { %p584_p2 = scmp.ge.s32.totalorder %s718_s21, 2  ;;  %s406_s6 = sand.u32 1, %s706_s18  }
 0x1ad   : > { %p920_p3 = scmp.ne.s32.totalorder %s913_s29, 0  ;;  %s407_s8 = scalar_lea.sflag [#allocation4], %s406_s6 }
 0x1af   : > { %p579_p4 = pnand %p584_p2, %p920_p3 }
 0x1b1   : > { %701 = dma.done.wait (!%p579_p4), %s407_s8, 256  }
 0x1b2   : > { %703 = vsyncadd (!%p579_p4), %s407_s8, 4294967040  ;;  %p16_p7 = scmp.ge.s32.totalorder %s782_s24, 4   ;;  %s921_s18 = smov %s710_s19 }
 0x1b3   : > { %s922_s19 = smov %s714_s20  ;;  %s923_s20 = smov %s793_s27 }
 0x1b4   : > { %s924_s21 = smov %s782_s24  ;;  %18 = sbr.rel (!%p16_p7) target bundleno = 4 (0x4), region = 80 }
 0x1bb   :  { %412 = vsyncpa [#allocation3], 1 }
 0x1bc   :  { %414 = vsyncpa [#allocation3 + $0x1], 1 }
 0x1bd   :  { %415 = vsyncpa [#allocation4], 1 }
 0x1be   :  { %417 = vsyncpa [#allocation4 + $0x1], 1 }

</bundles_post_ra>
